<compile_context>
chip_gen: v7x
topology: tpu7x:2x2x1
jax: 0.10.0
libtpu: 0.0.40
codegen_flags: <defaults>
</compile_context>

<pallas_src>
import jax
import jax.numpy as jnp
from jax.experimental import pallas as pl
from jax.experimental.pallas import tpu as pltpu

KSZ = 5  # conv kernel size


def _make_kernel(L, blk, chunk):
    """Fused TemporalBlock kernel for fixed L; batch on lanes, chunked."""
    assert blk % chunk == 0
    L2 = L - 4
    n_chunks = blk // chunk
    # h rows conv2 actually consumes (for L == 5 that is {0, 2, 4})
    needed = sorted({t + 2 * k - 4
                     for t in range(L2) for k in range(KSZ)
                     if 0 <= t + 2 * k - 4 < L})

    def kernel(p_ref, x_ref, o_ref):
        # p_ref : SMEM f32[12] = [w1[0:5], b1, w2[0:5], b2] (scalar-prefetched)
        # x_ref : VMEM [L, blk]  (time on sublanes, batch on lanes)
        # o_ref : VMEM [L, blk]

        # Read the 12 params once into locals (no repeated sld + splat).
        w1 = [p_ref[k] for k in range(KSZ)]
        b1 = p_ref[KSZ]
        w2 = [p_ref[KSZ + 1 + k] for k in range(KSZ)]
        b2 = p_ref[2 * KSZ + 1]

        @pl.loop(0, n_chunks)
        def _(j):
            start = pl.multiple_of(j * chunk, chunk)
            # Single load of the (L, chunk) lane-chunk; everything below
            # slices this *value* (no further ref gets).
            X = x_ref[:, pl.ds(start, chunk)].astype(jnp.float32)
            xr = [X[t:t + 1, :] for t in range(L)]           # (1, chunk) rows

            # conv1 (dil=1, causal pad 4) + chomp + ReLU -- needed rows only
            # h[t] = relu(b1 + sum_k w1[k] * x[t - 4 + k]), taps idx<0 are 0
            h = {}
            for t in needed:
                acc = None
                for k in range(KSZ):
                    src = t - 4 + k
                    if src < 0:
                        continue                             # left zero-pad
                    term = w1[k] * xr[src]
                    acc = term if acc is None else acc + term
                h[t] = jnp.maximum(acc + b1, 0.0)
            # dropout1: identity (eval mode)

            # conv2 (dil=2, causal pad 4) + chomp + ReLU, straight from vregs
            # y[t] = relu(b2 + sum_k w2[k] * h[t + 2k - 4])
            ys = []
            for t in range(L2):
                acc = None
                for k in range(KSZ):
                    src = t + 2 * k - 4
                    if src < 0 or src >= L:
                        continue
                    term = w2[k] * h[src]
                    acc = term if acc is None else acc + term
                ys.append(jnp.maximum(acc + b2, 0.0))
            # dropout2: identity (eval mode)

            # residual add (PyTorch broadcast over time when L2 == 1) + ReLU
            y = ys[0] if L2 == 1 else jnp.concatenate(ys, axis=0)
            o_ref[:, pl.ds(start, chunk)] = (
                jnp.maximum(X + y, 0.0).astype(o_ref.dtype))

    return kernel


def _pick_tiling(N, block_n, chunk_n):
    """Pick (grid block lanes, in-kernel chunk lanes)."""
    assert chunk_n % 128 == 0
    n128 = pl.cdiv(N, 128) * 128
    blk = max(128, min(block_n, n128))
    blk = pl.cdiv(blk, 128) * 128
    # Keep >=2 grid steps when there's enough work, so ("parallel",) actually
    # shards the grid across both TensorCores on v7x.
    if blk >= n128 and n128 >= 2 * 128:
        blk = pl.cdiv(n128 // 2, 128) * 128
    # The in-kernel lane-chunk loop must evenly divide the block.
    if blk > chunk_n:
        blk = (blk // chunk_n) * chunk_n
        chunk = chunk_n
    else:
        chunk = blk
    return blk, chunk


def temporal_block_tn(xT, w1, b1, w2, b2, *, block_n=65536, chunk_n=512,
                      io_dtype=None):
    """TemporalBlock on lane-dense (L, N) activations.  Returns (L, N).

    io_dtype=jnp.bfloat16 halves HBM traffic (useful on v5e); math stays f32.
    """
    L, N = xT.shape
    # Mirrors the PyTorch broadcast in `out + x` (raises unless L == 5).
    out_len = jnp.broadcast_shapes((L - 4,), (L,))[0]
    assert out_len == L

    io_dtype = xT.dtype if io_dtype is None else io_dtype
    xT = xT.astype(io_dtype)

    params = jnp.concatenate(
        [w1.reshape(-1), b1.reshape(-1), w2.reshape(-1), b2.reshape(-1)]
    ).astype(jnp.float32)                                     # (12,) -> SMEM

    blk, chunk = _pick_tiling(N, block_n, chunk_n)
    grid = (pl.cdiv(N, blk),)       # ragged last block handled by Pallas

    return pl.pallas_call(
        _make_kernel(L, blk, chunk),
        out_shape=jax.ShapeDtypeStruct((L, N), io_dtype),
        grid_spec=pltpu.PrefetchScalarGridSpec(
            num_scalar_prefetch=1,                            # params -> SMEM
            grid=grid,
            in_specs=[pl.BlockSpec((L, blk), lambda i, p: (0, i))],
            out_specs=pl.BlockSpec((L, blk), lambda i, p: (0, i)),
        ),
        compiler_params=pltpu.CompilerParams(
            dimension_semantics=("parallel",),    # megacore sharding on v7x
            vmem_limit_bytes=32 * 1024 * 1024,    # safe on v7x's 64 MiB VMEM
        ),
    )(params, xT)


def temporal_block(x, w1, b1, w2, b2, **kwargs):
    """PyTorch-layout adapter: x is (N, 1, L) float; returns (N, 1, L).

    Prefer `temporal_block_tn` and keep activations in (L, N) across the
    surrounding graph -- the two transposes here are extra full HBM passes.
    """
    N, C, L = x.shape
    assert C == 1, "TemporalBlock is built for 1 input channel"
    xT = jnp.transpose(x[:, 0, :])                            # (L, N) lane-dense
    outT = temporal_block_tn(xT, w1, b1, w2, b2, **kwargs)    # (L, N)
    return jnp.transpose(outT)[:, None, :]                    # (N, 1, L)


# --------------------------- glue: weight norm ------------------------------
def apply_weight_norm(v, g):
    """PyTorch weight_norm (dim=0): w = g * v / ||v||, norm over (in, k)."""
    nrm = jnp.sqrt(jnp.sum(v * v, axis=(1, 2), keepdims=True))
    return g.reshape(-1, 1, 1) * v / nrm


# --------------------------- pure-JAX reference -----------------------------
def ref_forward(x, w1, b1, w2, b2):
    dn = ("NCW", "OIW", "NCW")
    y1 = jax.lax.conv_general_dilated(x, w1, window_strides=(1,),
                                      padding=[(4, 4)], rhs_dilation=(1,),
                                      dimension_numbers=dn) + b1.reshape(1, 1, 1)
    h = jnp.maximum(y1[:, :, :-4], 0.0)
    y2 = jax.lax.conv_general_dilated(h, w2, window_strides=(1,),
                                      padding=[(4, 4)], rhs_dilation=(2,),
                                      dimension_numbers=dn) + b2.reshape(1, 1, 1)
    out = jnp.maximum(y2[:, :, :-4], 0.0)
    return jnp.maximum(out + x, 0.0)


if __name__ == "__main__":
    key = jax.random.PRNGKey(0)
    (k_x, k_v1, k_g1, k_b1, k_v2, k_g2, k_b2,
     k_x2, k_x3) = jax.random.split(key, 9)

    # parameters (mirrors init_weights' N(0, 0.01) scale, then weight_norm)
    v1 = 0.01 * jax.random.normal(k_v1, (1, 1, KSZ), dtype=jnp.float32)
    g1 = 1.0 + 0.01 * jax.random.normal(k_g1, (1,), dtype=jnp.float32)
    b1 = 0.1 * jax.random.normal(k_b1, (1,), dtype=jnp.float32)
    v2 = 0.01 * jax.random.normal(k_v2, (1, 1, KSZ), dtype=jnp.float32)
    g2 = 1.0 + 0.01 * jax.random.normal(k_g2, (1,), dtype=jnp.float32)
    b2 = 0.1 * jax.random.normal(k_b2, (1,), dtype=jnp.float32)
    w1 = apply_weight_norm(v1, g1)
    w2 = apply_weight_norm(v2, g2)

    # ---- small PyTorch-layout check: N=2, C=1, L=5 (L=5 required by the
    #      module's residual broadcast; see header note) ---------------------
    N, L = 2, 5
    x = jax.random.normal(k_x, (N, 1, L), dtype=jnp.float32)
    y = jax.block_until_ready(temporal_block(x, w1, b1, w2, b2))
    y_ref = ref_forward(x, w1, b1, w2, b2)
    assert y.shape == y_ref.shape, (y.shape, y_ref.shape)
    assert jnp.allclose(y, y_ref, rtol=1e-5, atol=1e-5), (
        f"max abs err {jnp.max(jnp.abs(y - y_ref))}")

    # ---- lane-dense (L, N) path, ragged last grid block (N not /128) ------
    N2 = 300
    xT2 = jax.random.normal(k_x2, (L, N2), dtype=jnp.float32)
    y2 = jax.block_until_ready(
        temporal_block_tn(xT2, w1, b1, w2, b2, block_n=256))
    y2_ref = ref_forward(xT2.T[:, None, :], w1, b1, w2, b2)[:, 0, :].T
    assert jnp.allclose(y2, y2_ref, rtol=1e-5, atol=1e-5), (
        f"max abs err {jnp.max(jnp.abs(y2 - y2_ref))}")

    # ---- multi-step grid + in-kernel lane-chunk loop -----------------------
    N3 = 2000
    xT3 = jax.random.normal(k_x3, (L, N3), dtype=jnp.float32)
    y3 = jax.block_until_ready(
        temporal_block_tn(xT3, w1, b1, w2, b2, block_n=1024, chunk_n=256))
    y3_ref = ref_forward(xT3.T[:, None, :], w1, b1, w2, b2)[:, 0, :].T
    assert jnp.allclose(y3, y3_ref, rtol=1e-5, atol=1e-5), (
        f"max abs err {jnp.max(jnp.abs(y3 - y3_ref))}")

    print("KERNEL_OK")
</pallas_src>

<mosaic_0001>
module attributes {stable_mosaic.version = 11 : i64} {
  func.func @kernel(%arg0: i32, %arg1: memref<12xf32, #tpu.memory_space<smem>>, %arg2: memref<5x128xf32, #tpu.memory_space<vmem>>, %arg3: memref<5x128xf32, #tpu.memory_space<vmem>>) attributes {dimension_semantics = [#tpu.dimension_semantics<parallel>], iteration_bounds = array<i64: 1>, scalar_prefetch = 1 : i64, scratch_operands = 0 : i64, tpu.core_type = #tpu.core_type<tc>, window_params = [{transform_indices = @transform_0, window_bounds = array<i64: 5, 128>}, {transform_indices = @transform_1, window_bounds = array<i64: 5, 128>}]} {
    %c0 = arith.constant 0 : index
    %0 = memref.load %arg1[%c0] : memref<12xf32, #tpu.memory_space<smem>>
    %c1 = arith.constant 1 : index
    %1 = memref.load %arg1[%c1] : memref<12xf32, #tpu.memory_space<smem>>
    %c2 = arith.constant 2 : index
    %2 = memref.load %arg1[%c2] : memref<12xf32, #tpu.memory_space<smem>>
    %c3 = arith.constant 3 : index
    %3 = memref.load %arg1[%c3] : memref<12xf32, #tpu.memory_space<smem>>
    %c4 = arith.constant 4 : index
    %4 = memref.load %arg1[%c4] : memref<12xf32, #tpu.memory_space<smem>>
    %c5 = arith.constant 5 : index
    %5 = memref.load %arg1[%c5] : memref<12xf32, #tpu.memory_space<smem>>
    %c8 = arith.constant 8 : index
    %6 = memref.load %arg1[%c8] : memref<12xf32, #tpu.memory_space<smem>>
    %c9 = arith.constant 9 : index
    %7 = memref.load %arg1[%c9] : memref<12xf32, #tpu.memory_space<smem>>
    %c10 = arith.constant 10 : index
    %8 = memref.load %arg1[%c10] : memref<12xf32, #tpu.memory_space<smem>>
    %c11 = arith.constant 11 : index
    %9 = memref.load %arg1[%c11] : memref<12xf32, #tpu.memory_space<smem>>
    %c0_i32 = arith.constant 0 : i32
    %c1_i32 = arith.constant 1 : i32
    %10 = arith.muli %c0_i32, %c1_i32 : i32
    %c0_i32_0 = arith.constant 0 : i32
    %11 = arith.addi %c0_i32_0, %10 : i32
    %c128_i32 = arith.constant 128 : i32
    %12 = arith.muli %11, %c128_i32 : i32
    %13 = tpu.assume_multiple %12, 128 : i32
    %c0_1 = arith.constant 0 : index
    %14 = arith.index_cast %13 : i32 to index
    %15 = vector.load %arg2[%c0_1, %14] : memref<5x128xf32, #tpu.memory_space<vmem>>, vector<5x128xf32>
    %16 = vector.extract_strided_slice %15 {offsets = [0, 0], sizes = [1, 128], strides = [1, 1]} : vector<5x128xf32> to vector<1x128xf32>
    %17 = vector.extract_strided_slice %15 {offsets = [1, 0], sizes = [1, 128], strides = [1, 1]} : vector<5x128xf32> to vector<1x128xf32>
    %18 = vector.extract_strided_slice %15 {offsets = [2, 0], sizes = [1, 128], strides = [1, 1]} : vector<5x128xf32> to vector<1x128xf32>
    %19 = vector.extract_strided_slice %15 {offsets = [3, 0], sizes = [1, 128], strides = [1, 1]} : vector<5x128xf32> to vector<1x128xf32>
    %20 = vector.extract_strided_slice %15 {offsets = [4, 0], sizes = [1, 128], strides = [1, 1]} : vector<5x128xf32> to vector<1x128xf32>
    %21 = vector.broadcast %4 : f32 to vector<1x128xf32>
    %22 = arith.mulf %21, %16 : vector<1x128xf32>
    %23 = vector.broadcast %5 : f32 to vector<1x128xf32>
    %24 = arith.addf %22, %23 : vector<1x128xf32>
    %cst = arith.constant 0.000000e+00 : f32
    %25 = vector.broadcast %cst : f32 to vector<1x128xf32>
    %26 = arith.maximumf %24, %25 : vector<1x128xf32>
    %27 = vector.broadcast %2 : f32 to vector<1x128xf32>
    %28 = arith.mulf %27, %16 : vector<1x128xf32>
    %29 = vector.broadcast %3 : f32 to vector<1x128xf32>
    %30 = arith.mulf %29, %17 : vector<1x128xf32>
    %31 = arith.addf %28, %30 : vector<1x128xf32>
    %32 = vector.broadcast %4 : f32 to vector<1x128xf32>
    %33 = arith.mulf %32, %18 : vector<1x128xf32>
    %34 = arith.addf %31, %33 : vector<1x128xf32>
    %35 = vector.broadcast %5 : f32 to vector<1x128xf32>
    %36 = arith.addf %34, %35 : vector<1x128xf32>
    %cst_2 = arith.constant 0.000000e+00 : f32
    %37 = vector.broadcast %cst_2 : f32 to vector<1x128xf32>
    %38 = arith.maximumf %36, %37 : vector<1x128xf32>
    %39 = vector.broadcast %0 : f32 to vector<1x128xf32>
    %40 = arith.mulf %39, %16 : vector<1x128xf32>
    %41 = vector.broadcast %1 : f32 to vector<1x128xf32>
    %42 = arith.mulf %41, %17 : vector<1x128xf32>
    %43 = arith.addf %40, %42 : vector<1x128xf32>
    %44 = vector.broadcast %2 : f32 to vector<1x128xf32>
    %45 = arith.mulf %44, %18 : vector<1x128xf32>
    %46 = arith.addf %43, %45 : vector<1x128xf32>
    %47 = vector.broadcast %3 : f32 to vector<1x128xf32>
    %48 = arith.mulf %47, %19 : vector<1x128xf32>
    %49 = arith.addf %46, %48 : vector<1x128xf32>
    %50 = vector.broadcast %4 : f32 to vector<1x128xf32>
    %51 = arith.mulf %50, %20 : vector<1x128xf32>
    %52 = arith.addf %49, %51 : vector<1x128xf32>
    %53 = vector.broadcast %5 : f32 to vector<1x128xf32>
    %54 = arith.addf %52, %53 : vector<1x128xf32>
    %cst_3 = arith.constant 0.000000e+00 : f32
    %55 = vector.broadcast %cst_3 : f32 to vector<1x128xf32>
    %56 = arith.maximumf %54, %55 : vector<1x128xf32>
    %57 = vector.broadcast %6 : f32 to vector<1x128xf32>
    %58 = arith.mulf %57, %26 : vector<1x128xf32>
    %59 = vector.broadcast %7 : f32 to vector<1x128xf32>
    %60 = arith.mulf %59, %38 : vector<1x128xf32>
    %61 = arith.addf %58, %60 : vector<1x128xf32>
    %62 = vector.broadcast %8 : f32 to vector<1x128xf32>
    %63 = arith.mulf %62, %56 : vector<1x128xf32>
    %64 = arith.addf %61, %63 : vector<1x128xf32>
    %65 = vector.broadcast %9 : f32 to vector<1x128xf32>
    %66 = arith.addf %64, %65 : vector<1x128xf32>
    %cst_4 = arith.constant 0.000000e+00 : f32
    %67 = vector.broadcast %cst_4 : f32 to vector<1x128xf32>
    %68 = arith.maximumf %66, %67 : vector<1x128xf32>
    %69 = vector.broadcast %68 : vector<1x128xf32> to vector<5x128xf32>
    %70 = arith.addf %15, %69 : vector<5x128xf32>
    %cst_5 = arith.constant 0.000000e+00 : f32
    %71 = vector.broadcast %cst_5 : f32 to vector<5x128xf32>
    %72 = arith.maximumf %70, %71 : vector<5x128xf32>
    %c0_6 = arith.constant 0 : index
    %73 = arith.index_cast %13 : i32 to index
    %74 = vector.load %arg3[%c0_6, %73] : memref<5x128xf32, #tpu.memory_space<vmem>>, vector<5x128xf32>
    tpu.vector_store %arg3[%c0_6, %73], %72 {strides = array<i32>} : memref<5x128xf32, #tpu.memory_space<vmem>>, vector<5x128xf32>,
    %c1_i32_7 = arith.constant 1 : i32
    return
  }
  func.func @transform_0(%arg0: i32, %arg1: memref<12xf32, #tpu.memory_space<smem>>) -> (i32, i32) {
    %c0_i32 = arith.constant 0 : i32
    %c0_i32_0 = arith.constant 0 : i32
    return %c0_i32, %arg0 : i32, i32
  }
  func.func @transform_1(%arg0: i32, %arg1: memref<12xf32, #tpu.memory_space<smem>>) -> (i32, i32) {
    %c0_i32 = arith.constant 0 : i32
    %c0_i32_0 = arith.constant 0 : i32
    return %c0_i32, %arg0 : i32, i32
  }
}

</mosaic_0001>

<bundles_post_ra>
// kernel: tpu_custom_call.1
= control target key start
LH: loop header
LB: loop body
LE: loop exit
PB: predicated region body
PF: predicated region fallthrough
CT: control target
= control target key end

     0   :  { %s139_s0 = inlined_call_operand.vmem [shape: f32[12], index: 0, kind: input, shape index: {}]   ;;  %s140_s1 = inlined_call_operand.vmem [shape: f32[5,2], index: 1, kind: input, shape index: {}]   ;;  %s141_s2 = inlined_call_operand.vmem [shape: f32[5,2], index: 2, kind: output, shape index: {}]  }
   0x1   :  { %s7_s11 = sshll.u32 %s139_s0, 4  ;;  %s8_s11 = int_to_ptr.vmem [resolvable:$true] %s7_s11 }
   0x2   :  { %s97_s12 = scalar_lea.vmem %s8_s11, 16  ;;  %p102_p1 = scmp.lt.s32.totalorder %s8_s11, %s8_s11 }
   0x3   :  { %p98_p0 = scmp.ne.s32.totalorder %s8_s11, %s97_s12  ;;  %p103_p2 = scmp.lt.s32.totalorder %s97_s12, %s97_s12 }
   0x5   :  { %p104_p3 = por %p103_p2, %p102_p1 }
   0x7   :  { %p105_p4 = pnand %p104_p3, %p98_p0 }
   0x9   :  { %108 = shalt.err (!%p105_p4)  }
   0xa   :  { %s111_s13 = smov [#allocation3]  }
   0xb   :  { %10 = dma.vmem_to_smem %s8_s11, 16, %s111_s13, [#allocation2] }
   0xc   :  { %109 = dma.done.wait [#allocation2], 16 }
   0xd   :  { %110 = vsyncadd [#allocation2], 4294967280 }
   0xe   :  { %12 = sfence }
   0xf   :  { %s15_s14 = sld [smem:[#allocation3]]  ;;  %s87_s15 = sld [smem:[#allocation3 + $0x1]]  ;;  %v25_v0 = vld [vmem:[%s140_s1] sm:$0x1f]  ;;  %v76_v32 = vlaneseq }
  0x10   :  { %s88_s16 = sld [smem:[#allocation3 + $0x2]]  ;;  %s89_s17 = sld [smem:[#allocation3 + $0x3]] }
  0x11   :  { %s90_s18 = sld [smem:[#allocation3 + $0x4]]  ;;  %s91_s19 = sld [smem:[#allocation3 + $0x5]]  ;;  %v77_v38 = vshrl.u32 %v76_v32, 7 }
  0x12   :  { %s133_s21 = sld [smem:[#allocation3 + $0x8]]  ;;  %s93_s22 = sld [smem:[#allocation3 + $0x9]] }
  0x13   :  { %s94_s1 = sld [smem:[#allocation3 + $0xa]]  ;;  %s95_s23 = sld [smem:[#allocation3 + $0xb]]  ;;  %v78_v42 = vsub.s32 0, %v77_v38 }
  0x15   :  { %v45_v1 = vstv %s15_s14  ;;  %v47_v2 = vstv %s87_s15 }
  0x16   :  { %v31_v3 = vstv %s88_s16  ;;  %v33_v4 = vstv %s89_s17  ;;  %v46_v5 = vmul.f32 %v45_v1, %v25_v0  ;;  %v48_v6 = vmul.f32 %v47_v2, %v25_v0 }
  0x17   :  { %v26_v7 = vstv %s90_s18  ;;  %v28_v8 = vstv %s91_s19  ;;  %v32_v9 = vmul.f32 %v31_v3, %v25_v0  ;;  %v34_v10 = vmul.f32 %v33_v4, %v25_v0 }
  0x18   :  { %v27_v11 = vmul.f32 %v26_v7, %v25_v0  ;;  %v50_v12 = vrot.slane %v48_v6, 1  ;;  %v65_v25 = vstv %s133_s21  ;;  %v67_v28 = vstv %s93_s22 }
  0x19   :  { %v36_v13 = vrot.slane %v34_v10, 1  ;;  %v54_v14 = vrot.slane %v32_v9, 2  ;;  %v57_v18 = vrot.slane %v34_v10, 3  ;;  %v70_v34 = vstv %s94_s1 }
  0x1a   :  { %v29_v15 = vadd.f32 %v28_v8, %v27_v11  ;;  %v40_v16 = vrot.slane %v27_v11, 2  ;;  %v52_v17 = vadd.f32 %v50_v12, %v46_v5  ;;  %v60_v21 = vrot.slane %v27_v11, 4 }
  0x1b   :  { %v38_v19 = vadd.f32 %v36_v13, %v32_v9  ;;  %v73_v39 = vstv %s95_s23 }
  0x1c   :  { %v56_v20 = vadd.f32 %v54_v14, %v52_v17  ;;  %v30_v22 = vmax.f32 %v29_v15, 0.0 }
  0x1d   :  { %v42_v23 = vadd.f32 %v40_v16, %v38_v19 }
  0x1e   :  { %v59_v24 = vadd.f32 %v57_v18, %v56_v20  ;;  %v66_v30 = vmul.f32 %v65_v25, %v30_v22 }
  0x1f   :  { %v43_v26 = vadd.f32 %v42_v23, %v28_v8 }
  0x20   :  { %v62_v27 = vadd.f32 %v60_v21, %v59_v24 }
  0x21   :  { %v44_v29 = vmax.f32 %v43_v26, 0.0 }
  0x22   :  { %v63_v31 = vadd.f32 %v62_v27, %v28_v8 }
  0x23   :  { %v68_v33 = vmul.f32 %v67_v28, %v44_v29 }
  0x24   :  { %v64_v35 = vmax.f32 %v63_v31, 0.0 }
  0x25   :  { %v69_v36 = vadd.f32 %v68_v33, %v66_v30 }
  0x26   :  { %v71_v37 = vmul.f32 %v70_v34, %v64_v35 }
  0x28   :  { %v72_v40 = vadd.f32 %v71_v37, %v69_v36 }
  0x2a   :  { %v74_v41 = vadd.f32 %v73_v39, %v72_v40 }
  0x2c   :  { %v75_v43 = vmax.f32 %v74_v41, 0.0 }
  0x2e   :  { %v79_v44 = vrot.slane %v75_v43, %v78_v42 }
  0x30   :  { %v80_v45 = vadd.f32 %v79_v44, %v25_v0 }
  0x32   :  { %v81_v46 = vmax.f32 %v80_v45, 0.0 }
  0x34   :  { %82 = vst [vmem:[%s141_s2] sm:$0x1f] %v81_v46 }

</bundles_post_ra>
